<compile_context>
chip_gen: v7x
topology: tpu7x:2x2x1
jax: 0.10.0
libtpu: 0.0.40
codegen_flags: <defaults>
</compile_context>

<pallas_src>
from functools import partial

import numpy as np
import jax
import jax.numpy as jnp
from jax import lax
from jax.experimental import pallas as pl
from jax.experimental.pallas import tpu as pltpu


def _irblock_kernel(x_ref, w1_ref, w2_ref, p_ref, o_ref, *, img_h):
    # x_ref : (BM, W*C) f32   lane-dense activations (BM = images_per_block * H)
    # w*_ref: (3, W*C, W*C) bf16  per-dy block-banded conv weights
    #         (BN input scales already folded into the input-channel blocks)
    # p_ref : (8, W*C) f32    per-channel params tiled over W:
    #         [b0', b1', alpha1', s2, b2, alpha_out, 0, 0]
    x = x_ref[...]                              # (BM, WC) f32
    p = p_ref[...]                              # (8, WC)  f32
    bm = x.shape[0]

    # Per-image boundary masks for the dy = -1 / +1 taps.  The block always
    # holds whole images (BM % H == 0 and blocks start at image boundaries),
    # so the local row index mod H is the row within its image.
    row = lax.broadcasted_iota(jnp.int32, (bm, 1), 0)
    keep_up = (row % img_h) != 0                # row h-1 exists in this image
    keep_dn = (row % img_h) != (img_h - 1)      # row h+1 exists in this image

    def conv3x3(t, w_ref):
        # Neighbour rows via sublane rotation (XLU) + boundary zero-masking;
        # the wrap-around rows of the roll are exactly the masked rows.
        up = jnp.where(keep_up, pltpu.roll(t, shift=1, axis=0), 0.0)
        dn = jnp.where(keep_dn, pltpu.roll(t, shift=bm - 1, axis=0), 0.0)
        # Three K=128 bf16 dots accumulated in f32 (no (BM, 3*WC) temporary).
        acc = jnp.dot(up.astype(jnp.bfloat16), w_ref[0],
                      preferred_element_type=jnp.float32)
        acc = acc + jnp.dot(t.astype(jnp.bfloat16), w_ref[1],
                            preferred_element_type=jnp.float32)
        acc = acc + jnp.dot(dn.astype(jnp.bfloat16), w_ref[2],
                            preferred_element_type=jnp.float32)
        return acc

    out = conv3x3(x + p[0:1], w1_ref)                 # bn0 (scale in w1) + conv1
    out = out + p[1:2]                                # bn1 bias (scale in w2)
    out = jnp.where(out >= 0, out, out * p[2:3])      # PReLU (alpha adj. for fold)
    out = conv3x3(out, w2_ref)                        # conv2 (3x3, stride 1, pad 1)
    out = out * p[3:4] + p[4:5]                       # bn2 (folded)
    out = out + x                                     # residual (pre-bn0 input)
    out = jnp.where(out >= 0, out, out * p[5:6])      # PReLU out
    o_ref[...] = out.astype(o_ref.dtype)              # full-lane unmasked store


def prepare_irblock(w1_hwio, w2_hwio, params, W):
    """One-time (weights are static at inference) packing of kernel operands.

    params rows: [s0, b0, s1, b1, alpha1, s2, b2, alpha_out], each (C,).
    """
    s0, b0, s1, b1, a1, s2, b2, ao = params
    C = w1_hwio.shape[2]
    WC = W * C

    # bn0 scale folded into conv1's input channels (s0 = 1/sqrt(var+eps) > 0):
    #   conv_{w1*s0}(x + b0/s0) == conv_{w1}(s0*x + b0)
    w1f = w1_hwio * s0[None, None, :, None]
    b0_eff = b0 / s0

    # bn1 scale carried exactly through the PReLU into conv2's input channels:
    #   PReLU_a(s*u + b) == fold * PReLU_a'(u + b/s)
    #   s > 0: fold = s,      a' = a
    #   s < 0: fold = s * a,  a' = 1/a
    # (Assumes s1 != 0, i.e. BN gamma nonzero — degenerate otherwise.)
    pos = s1 > 0
    fold = jnp.where(pos, s1, s1 * a1)
    a1_eff = jnp.where(pos, a1, 1.0 / a1)
    b1_eff = b1 / s1
    w2f = w2_hwio * fold[None, None, :, None]

    def banded(w):
        # HWIO (3,3,Cin,Cout) -> (3, W*C, W*C): for each dy one lane-dense
        # matrix applying all dx taps (left/right zero padding handled by the
        # band structure) to a (rows, W*C)-flattened activation matrix.
        blocks = []
        for dy in range(3):
            wdy = jnp.zeros((WC, WC), jnp.float32)
            for dx in range(3):
                wdy = wdy + jnp.kron(jnp.eye(W, k=1 - dx, dtype=jnp.float32),
                                     w[dy, dx].astype(jnp.float32))
            blocks.append(wdy)
        return jnp.stack(blocks, axis=0).astype(jnp.bfloat16)

    p6 = jnp.stack([b0_eff, b1_eff, a1_eff, s2, b2, ao], axis=0)      # (6, C)
    p8 = jnp.concatenate([p6, jnp.zeros((2, C), p6.dtype)], axis=0)   # (8, C)
    p_tiled = jnp.tile(p8.astype(jnp.float32), (1, W))                # (8, W*C)
    return banded(w1f), banded(w2f), p_tiled


@partial(jax.jit, static_argnames=("images_per_block",))
def irblock_forward(x_nchw, w1c, w2c, p_tiled, images_per_block=None):
    N, C, H, W = x_nchw.shape
    NH, WC = N * H, W * C
    if images_per_block is None:
        # Target ~512-row M blocks (multiple of H, divisor of N) so DMA
        # per-step overhead is amortized and blocks fit v7x's smaller VMEM.
        images_per_block = max(1, min(N, 512 // H))
        while N % images_per_block:
            images_per_block -= 1
    assert N % images_per_block == 0
    bm = images_per_block * H
    grid = (NH // bm,)

    # NCHW -> lane-dense (N*H, W*C); layout plumbing fused into this jit.
    x_flat = jnp.transpose(x_nchw, (0, 2, 3, 1)).reshape(NH, WC)
    kernel = partial(_irblock_kernel, img_h=H)
    out_flat = pl.pallas_call(
        kernel,
        out_shape=jax.ShapeDtypeStruct((NH, WC), x_flat.dtype),
        grid=grid,
        in_specs=[
            pl.BlockSpec((bm, WC), lambda i: (i, 0)),
            pl.BlockSpec((3, WC, WC), lambda i: (0, 0, 0)),   # grid-invariant
            pl.BlockSpec((3, WC, WC), lambda i: (0, 0, 0)),   # grid-invariant
            pl.BlockSpec((8, WC), lambda i: (0, 0)),          # grid-invariant
        ],
        out_specs=pl.BlockSpec((bm, WC), lambda i: (i, 0)),
        compiler_params=pltpu.CompilerParams(
            dimension_semantics=("parallel",)),
    )(x_flat, w1c, w2c, p_tiled)
    return jnp.transpose(out_flat.reshape(N, H, W, C), (0, 3, 1, 2))


def irblock_ref(x_nchw, w1, w2, params):
    """Plain-JAX f32 reference (matches the PyTorch eval-mode forward)."""
    x = jnp.transpose(x_nchw, (0, 2, 3, 1))
    s0, b0, s1, b1, a1, s2, b2, ao = [params[i].reshape(1, 1, 1, -1) for i in range(8)]
    dn = lax.conv_dimension_numbers(x.shape, w1.shape, ('NHWC', 'HWIO', 'NHWC'))
    out = x * s0 + b0
    out = lax.conv_general_dilated(out, w1, (1, 1), 'SAME', dimension_numbers=dn,
                                   precision=lax.Precision.HIGHEST)
    out = out * s1 + b1
    out = jnp.where(out >= 0, out, out * a1)
    out = lax.conv_general_dilated(out, w2, (1, 1), 'SAME', dimension_numbers=dn,
                                   precision=lax.Precision.HIGHEST)
    out = out * s2 + b2
    out = out + x
    out = jnp.where(out >= 0, out, out * ao)
    return jnp.transpose(out, (0, 3, 1, 2))


if __name__ == "__main__":
    # inplanes = planes = 8, stride = 1, downsample = None, se_ratio = 0
    # W*C = 16*8 = 128 -> exactly one vreg lane width per image row.
    N, C, H, W = 2, 8, 16, 16
    eps = 1e-5

    key = jax.random.PRNGKey(0)
    ks = jax.random.split(key, 16)

    x_nchw = jax.random.normal(ks[0], (N, C, H, W), jnp.float32)

    # Conv weights (HWIO), deterministic init.
    w1 = 0.1 * jax.random.normal(ks[1], (3, 3, C, C), jnp.float32)
    w2 = 0.1 * jax.random.normal(ks[2], (3, 3, C, C), jnp.float32)

    # BatchNorm running stats / affine params + PReLU alphas.
    mean0 = 0.1 * jax.random.normal(ks[3], (C,), jnp.float32)
    var0 = jax.random.uniform(ks[4], (C,), jnp.float32, 0.5, 1.5)
    gamma1 = 1.0 + 0.1 * jax.random.normal(ks[5], (C,), jnp.float32)
    beta1 = 0.1 * jax.random.normal(ks[6], (C,), jnp.float32)
    mean1 = 0.1 * jax.random.normal(ks[7], (C,), jnp.float32)
    var1 = jax.random.uniform(ks[8], (C,), jnp.float32, 0.5, 1.5)
    alpha1 = 0.25 + 0.01 * jax.random.normal(ks[9], (C,), jnp.float32)
    gamma2 = 1.0 + 0.1 * jax.random.normal(ks[10], (C,), jnp.float32)
    beta2 = 0.1 * jax.random.normal(ks[11], (C,), jnp.float32)
    mean2 = 0.1 * jax.random.normal(ks[12], (C,), jnp.float32)
    var2 = jax.random.uniform(ks[13], (C,), jnp.float32, 0.5, 1.5)
    alpha_out = 0.25 + 0.01 * jax.random.normal(ks[14], (C,), jnp.float32)

    # Fold BN into per-channel scale/bias (inference mode).
    s0 = 1.0 / jnp.sqrt(var0 + eps)
    b0 = -mean0 * s0
    s1 = gamma1 / jnp.sqrt(var1 + eps)
    b1 = beta1 - mean1 * s1
    s2 = gamma2 / jnp.sqrt(var2 + eps)
    b2 = beta2 - mean2 * s2
    params = jnp.stack([s0, b0, s1, b1, alpha1, s2, b2, alpha_out],
                       axis=0).astype(jnp.float32)  # (8, C)

    # One-time weight packing, then the fast forward pass.
    # images_per_block=1 -> bm=H=16, grid=(2,): exercises the parallel row
    # grid and the per-image boundary masking across grid blocks.
    w1c, w2c, p_tiled = prepare_irblock(w1, w2, params, W)
    out = irblock_forward(x_nchw, w1c, w2c, p_tiled, images_per_block=1)
    out = jax.block_until_ready(out)

    ref = irblock_ref(x_nchw, w1, w2, params)
    # Kernel uses bf16 MXU operands (f32 accumulation) vs. an f32-HIGHEST
    # reference, so the tolerance is set for bf16 rounding through two convs.
    np.testing.assert_allclose(np.asarray(out), np.asarray(ref),
                               rtol=2e-2, atol=2e-2)

    print("KERNEL_OK")
</pallas_src>

<mosaic_0001>
module attributes {stable_mosaic.version = 11 : i64} {
  func.func @_irblock_kernel(%arg0: i32, %arg1: memref<16x128xf32, #tpu.memory_space<vmem>>, %arg2: memref<3x128x128xbf16, #tpu.memory_space<vmem>>, %arg3: memref<3x128x128xbf16, #tpu.memory_space<vmem>>, %arg4: memref<8x128xf32, #tpu.memory_space<vmem>>, %arg5: memref<16x128xf32, #tpu.memory_space<vmem>>) attributes {dimension_semantics = [#tpu.dimension_semantics<parallel>], iteration_bounds = array<i64: 2>, scalar_prefetch = 0 : i64, scratch_operands = 0 : i64, tpu.core_type = #tpu.core_type<tc>, window_params = [{transform_indices = @transform_0, window_bounds = array<i64: 16, 128>}, {pipeline_mode = #tpu.pipeline_mode<synchronous>, transform_indices = @transform_1, window_bounds = array<i64: 3, 128, 128>}, {pipeline_mode = #tpu.pipeline_mode<synchronous>, transform_indices = @transform_2, window_bounds = array<i64: 3, 128, 128>}, {pipeline_mode = #tpu.pipeline_mode<synchronous>, transform_indices = @transform_3, window_bounds = array<i64: 8, 128>}, {transform_indices = @transform_4, window_bounds = array<i64: 16, 128>}]} {
    %c0 = arith.constant 0 : index
    %c0_0 = arith.constant 0 : index
    %0 = vector.load %arg1[%c0, %c0_0] : memref<16x128xf32, #tpu.memory_space<vmem>>, vector<16x128xf32>
    %c0_1 = arith.constant 0 : index
    %c0_2 = arith.constant 0 : index
    %1 = vector.load %arg4[%c0_1, %c0_2] : memref<8x128xf32, #tpu.memory_space<vmem>>, vector<8x128xf32>
    %2 = tpu.iota {dimensions = array<i32: 0>} : vector<16x1xi32>
    %c16_i32 = arith.constant 16 : i32
    %c0_i32 = arith.constant 0 : i32
    %3 = arith.cmpi eq, %c16_i32, %c0_i32 : i32
    %c1_i32 = arith.constant 1 : i32
    %4 = arith.select %3, %c1_i32, %c16_i32 : i32
    %5 = vector.broadcast %4 : i32 to vector<16x1xi32>
    %6 = arith.remsi %2, %5 : vector<16x1xi32>
    %c0_i32_3 = arith.constant 0 : i32
    %7 = vector.broadcast %c0_i32_3 : i32 to vector<16x1xi32>
    %8 = arith.cmpi ne, %6, %7 : vector<16x1xi32>
    %c0_i32_4 = arith.constant 0 : i32
    %9 = vector.broadcast %c0_i32_4 : i32 to vector<16x1xi32>
    %10 = arith.cmpi slt, %6, %9 : vector<16x1xi32>
    %c0_i32_5 = arith.constant 0 : i32
    %11 = arith.cmpi slt, %4, %c0_i32_5 : i32
    %12 = vector.broadcast %11 : i1 to vector<16x1xi1>
    %13 = vector.broadcast %12 : vector<16x1xi1> to vector<16x1xi1>
    %14 = arith.xori %10, %13 : vector<16x1xi1>
    %15 = arith.andi %14, %8 : vector<16x1xi1>
    %16 = vector.broadcast %4 : i32 to vector<16x1xi32>
    %17 = arith.addi %6, %16 : vector<16x1xi32>
    %18 = arith.select %15, %17, %6 : vector<16x1xi1>, vector<16x1xi32>
    %c0_i32_6 = arith.constant 0 : i32
    %19 = vector.broadcast %c0_i32_6 : i32 to vector<16x1xi32>
    %20 = arith.cmpi ne, %18, %19 : vector<16x1xi32>
    %c16_i32_7 = arith.constant 16 : i32
    %c0_i32_8 = arith.constant 0 : i32
    %21 = arith.cmpi eq, %c16_i32_7, %c0_i32_8 : i32
    %c1_i32_9 = arith.constant 1 : i32
    %22 = arith.select %21, %c1_i32_9, %c16_i32_7 : i32
    %23 = vector.broadcast %22 : i32 to vector<16x1xi32>
    %24 = arith.remsi %2, %23 : vector<16x1xi32>
    %c0_i32_10 = arith.constant 0 : i32
    %25 = vector.broadcast %c0_i32_10 : i32 to vector<16x1xi32>
    %26 = arith.cmpi ne, %24, %25 : vector<16x1xi32>
    %c0_i32_11 = arith.constant 0 : i32
    %27 = vector.broadcast %c0_i32_11 : i32 to vector<16x1xi32>
    %28 = arith.cmpi slt, %24, %27 : vector<16x1xi32>
    %c0_i32_12 = arith.constant 0 : i32
    %29 = arith.cmpi slt, %22, %c0_i32_12 : i32
    %30 = vector.broadcast %29 : i1 to vector<16x1xi1>
    %31 = vector.broadcast %30 : vector<16x1xi1> to vector<16x1xi1>
    %32 = arith.xori %28, %31 : vector<16x1xi1>
    %33 = arith.andi %32, %26 : vector<16x1xi1>
    %34 = vector.broadcast %22 : i32 to vector<16x1xi32>
    %35 = arith.addi %24, %34 : vector<16x1xi32>
    %36 = arith.select %33, %35, %24 : vector<16x1xi1>, vector<16x1xi32>
    %c15_i32 = arith.constant 15 : i32
    %37 = vector.broadcast %c15_i32 : i32 to vector<16x1xi32>
    %38 = arith.cmpi ne, %36, %37 : vector<16x1xi32>
    %39 = vector.extract_strided_slice %1 {offsets = [0, 0], sizes = [1, 128], strides = [1, 1]} : vector<8x128xf32> to vector<1x128xf32>
    %40 = vector.broadcast %39 : vector<1x128xf32> to vector<16x128xf32>
    %41 = arith.addf %0, %40 : vector<16x128xf32>
    %c1_i32_13 = arith.constant 1 : i32
    %42 = tpu.dynamic_rotate %41 by %c1_i32_13 dim 0 : vector<16x128xf32>, i32 -> vector<16x128xf32>
    %cst = arith.constant 0.000000e+00 : f32
    %43 = vector.shape_cast %20 : vector<16x1xi1> to vector<16x1xi1>
    %44 = vector.broadcast %43 : vector<16x1xi1> to vector<16x128xi1>
    %45 = vector.broadcast %cst : f32 to vector<16x128xf32>
    %46 = arith.select %44, %42, %45 : vector<16x128xi1>, vector<16x128xf32>
    %c15_i32_14 = arith.constant 15 : i32
    %47 = tpu.dynamic_rotate %41 by %c15_i32_14 dim 0 : vector<16x128xf32>, i32 -> vector<16x128xf32>
    %cst_15 = arith.constant 0.000000e+00 : f32
    %48 = vector.shape_cast %38 : vector<16x1xi1> to vector<16x1xi1>
    %49 = vector.broadcast %48 : vector<16x1xi1> to vector<16x128xi1>
    %50 = vector.broadcast %cst_15 : f32 to vector<16x128xf32>
    %51 = arith.select %49, %47, %50 : vector<16x128xi1>, vector<16x128xf32>
    %52 = arith.truncf %46 : vector<16x128xf32> to vector<16x128xbf16>
    %c0_16 = arith.constant 0 : index
    %c0_17 = arith.constant 0 : index
    %c0_18 = arith.constant 0 : index
    %53 = vector.load %arg2[%c0_16, %c0_17, %c0_18] : memref<3x128x128xbf16, #tpu.memory_space<vmem>>, vector<1x128x128xbf16>
    %54 = vector.shape_cast %53 : vector<1x128x128xbf16> to vector<128x128xbf16>
    %cst_19 = arith.constant dense<0.000000e+00> : vector<16x128xf32>
    %55 = tpu.matmul %52, %54, %cst_19 {dimension_numbers = #tpu.dot_dimension_numbers<[1], [0], [0], [1], [0, 0, 1, 1], [], []>} : vector<16x128xbf16>, vector<128x128xbf16>, vector<16x128xf32> -> vector<16x128xf32>
    %56 = arith.truncf %41 : vector<16x128xf32> to vector<16x128xbf16>
    %c1 = arith.constant 1 : index
    %c0_20 = arith.constant 0 : index
    %c0_21 = arith.constant 0 : index
    %57 = vector.load %arg2[%c1, %c0_20, %c0_21] : memref<3x128x128xbf16, #tpu.memory_space<vmem>>, vector<1x128x128xbf16>
    %58 = vector.shape_cast %57 : vector<1x128x128xbf16> to vector<128x128xbf16>
    %cst_22 = arith.constant dense<0.000000e+00> : vector<16x128xf32>
    %59 = tpu.matmul %56, %58, %cst_22 {dimension_numbers = #tpu.dot_dimension_numbers<[1], [0], [0], [1], [0, 0, 1, 1], [], []>} : vector<16x128xbf16>, vector<128x128xbf16>, vector<16x128xf32> -> vector<16x128xf32>
    %60 = arith.addf %55, %59 : vector<16x128xf32>
    %61 = arith.truncf %51 : vector<16x128xf32> to vector<16x128xbf16>
    %c2 = arith.constant 2 : index
    %c0_23 = arith.constant 0 : index
    %c0_24 = arith.constant 0 : index
    %62 = vector.load %arg2[%c2, %c0_23, %c0_24] : memref<3x128x128xbf16, #tpu.memory_space<vmem>>, vector<1x128x128xbf16>
    %63 = vector.shape_cast %62 : vector<1x128x128xbf16> to vector<128x128xbf16>
    %cst_25 = arith.constant dense<0.000000e+00> : vector<16x128xf32>
    %64 = tpu.matmul %61, %63, %cst_25 {dimension_numbers = #tpu.dot_dimension_numbers<[1], [0], [0], [1], [0, 0, 1, 1], [], []>} : vector<16x128xbf16>, vector<128x128xbf16>, vector<16x128xf32> -> vector<16x128xf32>
    %65 = arith.addf %60, %64 : vector<16x128xf32>
    %66 = vector.extract_strided_slice %1 {offsets = [1, 0], sizes = [1, 128], strides = [1, 1]} : vector<8x128xf32> to vector<1x128xf32>
    %67 = vector.broadcast %66 : vector<1x128xf32> to vector<16x128xf32>
    %68 = arith.addf %65, %67 : vector<16x128xf32>
    %cst_26 = arith.constant 0.000000e+00 : f32
    %69 = vector.broadcast %cst_26 : f32 to vector<16x128xf32>
    %70 = arith.cmpf oge, %68, %69 : vector<16x128xf32>
    %71 = vector.extract_strided_slice %1 {offsets = [2, 0], sizes = [1, 128], strides = [1, 1]} : vector<8x128xf32> to vector<1x128xf32>
    %72 = vector.broadcast %71 : vector<1x128xf32> to vector<16x128xf32>
    %73 = arith.mulf %68, %72 : vector<16x128xf32>
    %74 = arith.select %70, %68, %73 : vector<16x128xi1>, vector<16x128xf32>
    %c1_i32_27 = arith.constant 1 : i32
    %75 = tpu.dynamic_rotate %74 by %c1_i32_27 dim 0 : vector<16x128xf32>, i32 -> vector<16x128xf32>
    %cst_28 = arith.constant 0.000000e+00 : f32
    %76 = vector.shape_cast %20 : vector<16x1xi1> to vector<16x1xi1>
    %77 = vector.broadcast %76 : vector<16x1xi1> to vector<16x128xi1>
    %78 = vector.broadcast %cst_28 : f32 to vector<16x128xf32>
    %79 = arith.select %77, %75, %78 : vector<16x128xi1>, vector<16x128xf32>
    %c15_i32_29 = arith.constant 15 : i32
    %80 = tpu.dynamic_rotate %74 by %c15_i32_29 dim 0 : vector<16x128xf32>, i32 -> vector<16x128xf32>
    %cst_30 = arith.constant 0.000000e+00 : f32
    %81 = vector.shape_cast %38 : vector<16x1xi1> to vector<16x1xi1>
    %82 = vector.broadcast %81 : vector<16x1xi1> to vector<16x128xi1>
    %83 = vector.broadcast %cst_30 : f32 to vector<16x128xf32>
    %84 = arith.select %82, %80, %83 : vector<16x128xi1>, vector<16x128xf32>
    %85 = arith.truncf %79 : vector<16x128xf32> to vector<16x128xbf16>
    %c0_31 = arith.constant 0 : index
    %c0_32 = arith.constant 0 : index
    %c0_33 = arith.constant 0 : index
    %86 = vector.load %arg3[%c0_31, %c0_32, %c0_33] : memref<3x128x128xbf16, #tpu.memory_space<vmem>>, vector<1x128x128xbf16>
    %87 = vector.shape_cast %86 : vector<1x128x128xbf16> to vector<128x128xbf16>
    %cst_34 = arith.constant dense<0.000000e+00> : vector<16x128xf32>
    %88 = tpu.matmul %85, %87, %cst_34 {dimension_numbers = #tpu.dot_dimension_numbers<[1], [0], [0], [1], [0, 0, 1, 1], [], []>} : vector<16x128xbf16>, vector<128x128xbf16>, vector<16x128xf32> -> vector<16x128xf32>
    %89 = arith.truncf %74 : vector<16x128xf32> to vector<16x128xbf16>
    %c1_35 = arith.constant 1 : index
    %c0_36 = arith.constant 0 : index
    %c0_37 = arith.constant 0 : index
    %90 = vector.load %arg3[%c1_35, %c0_36, %c0_37] : memref<3x128x128xbf16, #tpu.memory_space<vmem>>, vector<1x128x128xbf16>
    %91 = vector.shape_cast %90 : vector<1x128x128xbf16> to vector<128x128xbf16>
    %cst_38 = arith.constant dense<0.000000e+00> : vector<16x128xf32>
    %92 = tpu.matmul %89, %91, %cst_38 {dimension_numbers = #tpu.dot_dimension_numbers<[1], [0], [0], [1], [0, 0, 1, 1], [], []>} : vector<16x128xbf16>, vector<128x128xbf16>, vector<16x128xf32> -> vector<16x128xf32>
    %93 = arith.addf %88, %92 : vector<16x128xf32>
    %94 = arith.truncf %84 : vector<16x128xf32> to vector<16x128xbf16>
    %c2_39 = arith.constant 2 : index
    %c0_40 = arith.constant 0 : index
    %c0_41 = arith.constant 0 : index
    %95 = vector.load %arg3[%c2_39, %c0_40, %c0_41] : memref<3x128x128xbf16, #tpu.memory_space<vmem>>, vector<1x128x128xbf16>
    %96 = vector.shape_cast %95 : vector<1x128x128xbf16> to vector<128x128xbf16>
    %cst_42 = arith.constant dense<0.000000e+00> : vector<16x128xf32>
    %97 = tpu.matmul %94, %96, %cst_42 {dimension_numbers = #tpu.dot_dimension_numbers<[1], [0], [0], [1], [0, 0, 1, 1], [], []>} : vector<16x128xbf16>, vector<128x128xbf16>, vector<16x128xf32> -> vector<16x128xf32>
    %98 = arith.addf %93, %97 : vector<16x128xf32>
    %99 = vector.extract_strided_slice %1 {offsets = [3, 0], sizes = [1, 128], strides = [1, 1]} : vector<8x128xf32> to vector<1x128xf32>
    %100 = vector.broadcast %99 : vector<1x128xf32> to vector<16x128xf32>
    %101 = arith.mulf %98, %100 : vector<16x128xf32>
    %102 = vector.extract_strided_slice %1 {offsets = [4, 0], sizes = [1, 128], strides = [1, 1]} : vector<8x128xf32> to vector<1x128xf32>
    %103 = vector.broadcast %102 : vector<1x128xf32> to vector<16x128xf32>
    %104 = arith.addf %101, %103 : vector<16x128xf32>
    %105 = arith.addf %104, %0 : vector<16x128xf32>
    %cst_43 = arith.constant 0.000000e+00 : f32
    %106 = vector.broadcast %cst_43 : f32 to vector<16x128xf32>
    %107 = arith.cmpf oge, %105, %106 : vector<16x128xf32>
    %108 = vector.extract_strided_slice %1 {offsets = [5, 0], sizes = [1, 128], strides = [1, 1]} : vector<8x128xf32> to vector<1x128xf32>
    %109 = vector.broadcast %108 : vector<1x128xf32> to vector<16x128xf32>
    %110 = arith.mulf %105, %109 : vector<16x128xf32>
    %111 = arith.select %107, %105, %110 : vector<16x128xi1>, vector<16x128xf32>
    %c0_44 = arith.constant 0 : index
    %c0_45 = arith.constant 0 : index
    %112 = vector.load %arg5[%c0_44, %c0_45] : memref<16x128xf32, #tpu.memory_space<vmem>>, vector<16x128xf32>
    tpu.vector_store %arg5[%c0_44, %c0_45], %111 {strides = array<i32>} : memref<16x128xf32, #tpu.memory_space<vmem>>, vector<16x128xf32>,
    return
  }
  func.func @transform_0(%arg0: i32) -> (i32, i32) {
    %c0_i32 = arith.constant 0 : i32
    %c0_i32_0 = arith.constant 0 : i32
    return %arg0, %c0_i32 : i32, i32
  }
  func.func @transform_1(%arg0: i32) -> (i32, i32, i32) {
    %c0_i32 = arith.constant 0 : i32
    %c0_i32_0 = arith.constant 0 : i32
    %c0_i32_1 = arith.constant 0 : i32
    %c0_i32_2 = arith.constant 0 : i32
    return %c0_i32, %c0_i32_0, %c0_i32_1 : i32, i32, i32
  }
  func.func @transform_2(%arg0: i32) -> (i32, i32, i32) {
    %c0_i32 = arith.constant 0 : i32
    %c0_i32_0 = arith.constant 0 : i32
    %c0_i32_1 = arith.constant 0 : i32
    %c0_i32_2 = arith.constant 0 : i32
    return %c0_i32, %c0_i32_0, %c0_i32_1 : i32, i32, i32
  }
  func.func @transform_3(%arg0: i32) -> (i32, i32) {
    %c0_i32 = arith.constant 0 : i32
    %c0_i32_0 = arith.constant 0 : i32
    %c0_i32_1 = arith.constant 0 : i32
    return %c0_i32, %c0_i32_0 : i32, i32
  }
  func.func @transform_4(%arg0: i32) -> (i32, i32) {
    %c0_i32 = arith.constant 0 : i32
    %c0_i32_0 = arith.constant 0 : i32
    return %arg0, %c0_i32 : i32, i32
  }
}

</mosaic_0001>

<bundles_post_ra>
// kernel: irblock_forward.1
= control target key start
LH: loop header
LB: loop body
LE: loop exit
PB: predicated region body
PF: predicated region fallthrough
CT: control target
= control target key end

     0   :  { %s1430_s15 = smov 0   ;;  %s1733_s0 = inlined_call_operand.vmem [shape: f32[32,128], index: 0, kind: input, shape index: {}]   ;;  %s1734_s1 = inlined_call_operand.vmem [shape: bf16[3,128,128], index: 1, kind: input, shape index: {}]   ;;  %s1735_s2 = inlined_call_operand.vmem [shape: bf16[3,128,128], index: 2, kind: input, shape index: {}]   ;;  %s1736_s3 = inlined_call_operand.vmem [shape: f32[8,128], index: 3, kind: input, shape index: {}]   ;;  %s1737_s4 = inlined_call_operand.vmem [shape: f32[32,128], index: 4, kind: output, shape index: {}]  }
   0x1 LB: > { %s1018_s16 = sadd.s32 4294967295, %s1400_s15   ;;  %p1022_p0 = scmp.ge.s32.totalorder %s1400_s15, 1  ;;  %s1400_s15 = sphi %s1430_s15, %s14_s15  }
   0x2   : > { %p163_p1 = scmp.lt.s32.totalorder %s1400_s15, 3 }
   0x4   : > { %p164_p2 = pnand %p1022_p0, %p163_p1 }
   0x5   : > { %v1346_v0 = vld [vmem:[%s1734_s1 + $0x40] sm:$0xff] (!%p164_p2)   ;;  %v1402_v1 = vmov (!%p164_p2), 0.0   ;;  %v1347_v2 = vld [vmem:[%s1734_s1 + $0x48] sm:$0xff] (!%p164_p2)   ;;  %vm1403_vm0 = vmmov (!%p164_p2), 0   ;;  %s1023_s21 = sshll.u32 (!%p164_p2), %s1018_s16, 1  ;;  %v1348_v3 = vld [vmem:[%s1734_s1 + $0x50] sm:$0xff] (!%p164_p2)   ;;  %v205_v4 = vlaneseq (!%p164_p2) }
   0x6   : > { %167 = sbr.rel (%p164_p2) target bundleno = 613 (0x265), region = 36  ;;  %1207 = vmatprep.subr.bf16.mxu0 (!%p164_p2), %v1402_v1  ;;  %1267 = vmatprep.subr.bf16.mxu1 (!%p164_p2), %v1402_v1  ;;  %p190_p3 = scmp.lt.s32.totalorder (!%p164_p2), %s1023_s21, 3  ;;  %v1349_v5 = vld [vmem:[%s1734_s1 + $0x58] sm:$0xff] (!%p164_p2)   ;;  %v1350_v7 = vld [vmem:[%s1734_s1 + $0x60] sm:$0xff] (!%p164_p2)   ;;  %v1351_v8 = vld [vmem:[%s1734_s1 + $0x68] sm:$0xff] (!%p164_p2)   ;;  %vm1404_vm3 = vmmov (!%p164_p2), 1  }
   0x7   : > { %1208 = vmatpush3.bf16.msra.mxu0 (!%p164_p2), %v1346_v0  ;;  %1223 = vmatprep.mubr.msk.bf16.mxu0 (!%p164_p2), %vm1403_vm0, %v1402_v1  ;;  %v1461_v6 = vshrl.u32 (!%p164_p2), %v205_v4, 7  ;;  %v1480_v10 = vld [vmem:[%s1736_s3] sm:$0xff] (!%p164_p2)  ;;  %v1352_v11 = vld [vmem:[%s1734_s1 + $0x70] sm:$0xff] (!%p164_p2)   ;;  %v1353_v15 = vld [vmem:[%s1734_s1 + $0x78] sm:$0xff] (!%p164_p2)  }
   0x8   : > { %1209 = vmatprep.subr.bf16.mxu0 (!%p164_p2), %v1402_v1  ;;  %1283 = vmatprep.mubr.msk.bf16.mxu1 (!%p164_p2), %vm1403_vm0, %v1402_v1  ;;  %v1354_v18 = vld [vmem:[%s1734_s1] sm:$0xff] (!%p164_p2)   ;;  %v1355_v20 = vld [vmem:[%s1734_s1 + $0x8] sm:$0xff] (!%p164_p2)   ;;  %v1356_v21 = vld [vmem:[%s1734_s1 + $0x10] sm:$0xff] (!%p164_p2)  }
   0x9   : > { %v238_v9 = vsub.s32 (!%p164_p2), 0, %v1461_v6  ;;  %v1357_v22 = vld [vmem:[%s1734_s1 + $0x18] sm:$0xff] (!%p164_p2)   ;;  %v1358_v23 = vld [vmem:[%s1734_s1 + $0x20] sm:$0xff] (!%p164_p2)   ;;  %v1359_v24 = vld [vmem:[%s1734_s1 + $0x28] sm:$0xff] (!%p164_p2)   ;;  %v212_v28 = vand.u32 (!%p164_p2), 15, %v1461_v6  ;;  %vm244_vm1 = vcmp.lt.s32.totalorder (!%p164_p2), %v1461_v6, 1 }
   0xa   : > { %v1360_v27 = vld [vmem:[%s1734_s1 + $0x30] sm:$0xff] (!%p164_p2)   ;;  %v1361_v29 = vld [vmem:[%s1734_s1 + $0x38] sm:$0xff] (!%p164_p2)   ;;  %v1362_v34 = vld [vmem:[%s1734_s1 + $0x80] sm:$0xff] (!%p164_p2)   ;;  %v207_v40 = vadd.s32 (!%p164_p2), 8, %v1461_v6  ;;  %vm255_vm5 = vcmp.lt.s32.totalorder (!%p164_p2), %v1461_v6, 7 }
   0xb   : > { %1210 = vmatpush3.bf16.msra.mxu0 (!%p164_p2), %v1347_v2  ;;  %v239_v13 = vrot.slane (!%p164_p2), %v1480_v10, %v238_v9  ;;  %vm232_vm2 = vcmp.ne.s32.totalorder (!%p164_p2), %v212_v28, 0  ;;  %v1363_v35 = vld [vmem:[%s1734_s1 + $0x88] sm:$0xff] (!%p164_p2)   ;;  %v1364_v36 = vld [vmem:[%s1734_s1 + $0x90] sm:$0xff] (!%p164_p2)   ;;  %v1365_v37 = vld [vmem:[%s1734_s1 + $0x98] sm:$0xff] (!%p164_p2)  }
   0xc   : > { %1211 = vmatprep.subr.bf16.mxu0 (!%p164_p2), %v1402_v1  ;;  %vm1547_vm4 = vmpackc.low (!%p164_p2), %vm1404_vm3, %vm232_vm2  ;;  %v1366_v38 = vld [vmem:[%s1734_s1 + $0xa0] sm:$0xff] (!%p164_p2)   ;;  %v1367_v39 = vld [vmem:[%s1734_s1 + $0xa8] sm:$0xff] (!%p164_p2)   ;;  %v219_v44 = vand.u32 (!%p164_p2), 15, %v207_v40 }
   0xd   : > { %s1743_s21 = smov (!%p190_p3, %s1023_s21), 3  ;;  %v1368_v43 = vld [vmem:[%s1734_s1 + $0xb0] sm:$0xff]   ;;  %v1369_v45 = vld [vmem:[%s1734_s1 + $0xb8] sm:$0xff]   ;;  %v1370_v50 = vld [vmem:[%s1735_s2 + $0x40] sm:$0xff]  }
   0xe   : > { %s1024_s28 = sshll.u32 %s1743_s21, 3  ;;  %vm235_vm6 = vcmp.ne.s32.totalorder %v219_v44, 15  ;;  %1268 = vmatpush3.bf16.msra.mxu1 %v1370_v50  ;;  %v1371_v51 = vld [vmem:[%s1735_s2 + $0x48] sm:$0xff]   ;;  %v1372_v52 = vld [vmem:[%s1735_s2 + $0x50] sm:$0xff]   ;;  %v1373_v53 = vld [vmem:[%s1735_s2 + $0x58] sm:$0xff]  }
   0xf   : > { %1212 = vmatpush3.bf16.msra.mxu0 %v1348_v3  ;;  %s193_s7 = scalar_lea.vmem %s1733_s0, %s1024_s28  ;;  %vm1596_vm7 = vmpackc.low %vm235_vm6, %vm1404_vm3  ;;  %1269 = vmatprep.subr.bf16.mxu1 %v1402_v1  ;;  %v1374_v54 = vld [vmem:[%s1735_s2 + $0x60] sm:$0xff]   ;;  %v1375_v55 = vld [vmem:[%s1735_s2 + $0x68] sm:$0xff]   ;;  %s199_s30 = scalar_lea.vmem %s1737_s4, %s1024_s28 }
  0x10   : > { %1213 = vmatprep.subr.bf16.mxu0 %v1402_v1  ;;  %v1486_v12 = vld [vmem:[%s193_s7] sm:$0xff]  ;;  %v1489_v14 = vld [vmem:[%s193_s7 + $0x8] sm:$0xff]  ;;  %v1376_v56 = vld [vmem:[%s1735_s2 + $0x70] sm:$0xff]  }
  0x11   : > { %v1496_v16 = vadd.f32 %v239_v13, %v1486_v12  ;;  %v1499_v17 = vadd.f32 %v239_v13, %v1489_v14  ;;  %v1377_v57 = vld [vmem:[%s1735_s2 + $0x78] sm:$0xff]   ;;  %v1391_v50 = vld [vmem:[%s1735_s2 + $0xa8] sm:$0xff]  }
  0x12   : > { %1270 = vmatpush3.bf16.msra.mxu1 %v1371_v51  ;;  %v1381_v40 = vld [vmem:[%s1735_s2 + $0x18] sm:$0xff]   ;;  %v1392_v51 = vld [vmem:[%s1735_s2 + $0xb0] sm:$0xff]  }
  0x13   : > { %1214 = vmatpush3.bf16.msra.mxu0 %v1349_v5  ;;  %v281_v19 = vpack.c.bf16 %v1499_v17, %v1496_v16  ;;  %v242_v25 = vrot.slane %v1496_v16, 7  ;;  %v243_v26 = vrot.slane %v1499_v17, 7  ;;  %v253_v41 = vrot.slane %v1496_v16, 1  ;;  %1271 = vmatprep.subr.bf16.mxu1 %v1402_v1  ;;  %v1385_v44 = vld [vmem:[%s1735_s2 + $0x38] sm:$0xff]  }
  0x14   : > { %1215 = vmatprep.subr.bf16.mxu0 %v1402_v1  ;;  %v254_v42 = vrot.slane %v1499_v17, 1  ;;  %v588_v5 = vsub.s32 1, %v1461_v6  ;;  %v1389_v33 = vld [vmem:[%s1735_s2 + $0x98] sm:$0xff]  }
  0x15   : > { %v245_v30 = vsel %vm244_vm1, %v242_v25, %v243_v26  ;;  %v246_v31 = vsel %vm244_vm1, %v243_v26, %v242_v25  ;;  %v1378_v26 = vld [vmem:[%s1735_s2] sm:$0xff]  }
  0x16   : > { %v1060_v32 = vpack.c.bf16 %v245_v30, %v246_v31  ;;  %v256_v46 = vsel %vm255_vm5, %v253_v41, %v254_v42  ;;  %v257_v47 = vsel %vm255_vm5, %v254_v42, %v253_v41  ;;  %1272 = vmatpush3.bf16.msra.mxu1 %v1372_v52  ;;  %v1382_v41 = vld [vmem:[%s1735_s2 + $0x20] sm:$0xff]   ;;  %v1383_v42 = vld [vmem:[%s1735_s2 + $0x28] sm:$0xff]   ;;  %v1393_v52 = vld [vmem:[%s1735_s2 + $0xb8] sm:$0xff]  }
  0x17   : > { %1216 = vmatpush3.bf16.msra.mxu0 %v1350_v7  ;;  %v1087_v48 = vpack.c.bf16 %v257_v47, %v256_v46  ;;  %1273 = vmatprep.subr.bf16.mxu1 %v1402_v1  ;;  %v596_v7 = vsub.s32 2, %v1461_v6  ;;  %v1387_v46 = vld [vmem:[%s1735_s2 + $0x88] sm:$0xff]   ;;  %v1388_v47 = vld [vmem:[%s1735_s2 + $0x90] sm:$0xff]  }
  0x18   : > { %1217 = vmatprep.subr.bf16.mxu0 %v1402_v1 }
  0x19   : > { %v597_v13 = vrot.slane %v1480_v10, %v596_v7 }
  0x1a   : > { %1274 = vmatpush3.bf16.msra.mxu1 %v1373_v53  ;;  %v938_v53 = vsub.s32 3, %v1461_v6 }
  0x1b   : > { %1218 = vmatpush3.bf16.msra.mxu0 %v1351_v8  ;;  %1275 = vmatprep.subr.bf16.mxu1 %v1402_v1  ;;  %v589_v8 = vrot.slane %v1480_v10, %v588_v5 }
  0x1c   : > { %1219 = vmatprep.subr.bf16.mxu0 %v1402_v1 }
  0x1e   : > { %1276 = vmatpush3.bf16.msra.mxu1 %v1374_v54  ;;  %v944_v54 = vsub.s32 4, %v1461_v6 }
  0x1f   : > { %1220 = vmatpush3.bf16.msra.mxu0 %v1352_v11  ;;  %1277 = vmatprep.subr.bf16.mxu1 %v1402_v1 }
  0x20   : > { %1221 = vmatprep.subr.bf16.mxu0 %v1402_v1 }
  0x22   : > { %1278 = vmatpush3.bf16.msra.mxu1 %v1375_v55  ;;  %v939_v55 = vrot.slane %v1480_v10, %v938_v53 }
  0x23   : > { %1222 = vmatpush3.bf16.msra.mxu0 %v1353_v15  ;;  %1279 = vmatprep.subr.bf16.mxu1 %v1402_v1 }
  0x24   : > { %1227 = vmatprep.subr.bf16.mxu0 %v1402_v1 }
  0x26   : > { %1224 = vmatmul.mubr.bf16.vlgmr.msra.gmra.mrb[0].mxu0 %v281_v19  ;;  %1280 = vmatpush3.bf16.msra.mxu1 %v1376_v56  ;;  %v945_v56 = vrot.slane %v1480_v10, %v944_v54 }
  0x27   : > { %1228 = vmatpush3.bf16.msra.mxu0 %v1354_v18  ;;  %1243 = vmatprep.mubr.msk.bf16.mxu0 %vm1403_vm0, %v1402_v1 }
  0x28   : > { %1229 = vmatprep.subr.bf16.mxu0 %v1402_v1  ;;  %1281 = vmatprep.subr.bf16.mxu1 %v1402_v1 }
  0x2a   : > { %1282 = vmatpush3.bf16.msra.mxu1 %v1377_v57  ;;  %v954_v57 = vsub.s32 5, %v1461_v6 }
  0x2b   : > { %1230 = vmatpush3.bf16.msra.mxu0 %v1355_v20  ;;  %1287 = vmatprep.subr.bf16.mxu1 %v1402_v1 }
  0x2c   : > { %1231 = vmatprep.subr.bf16.mxu0 %v1402_v1 }
  0x2f   : > { %1232 = vmatpush3.bf16.msra.mxu0 %v1356_v21 }
  0x30   : > { %1233 = vmatprep.subr.bf16.mxu0 %v1402_v1 }
  0x33   : > { %1234 = vmatpush3.bf16.msra.mxu0 %v1357_v22 }
  0x34   : > { %1235 = vmatprep.subr.bf16.mxu0 %v1402_v1 }
  0x37   : > { %1236 = vmatpush3.bf16.msra.mxu0 %v1358_v23 }
  0x38   : > { %1237 = vmatprep.subr.bf16.mxu0 %v1402_v1 }
  0x3b   : > { %1238 = vmatpush3.bf16.msra.mxu0 %v1359_v24 }
  0x3c   : > { %1239 = vmatprep.subr.bf16.mxu0 %v1402_v1 }
  0x3f   : > { %1240 = vmatpush3.bf16.msra.mxu0 %v1360_v27 }
  0x40   : > { %1241 = vmatprep.subr.bf16.mxu0 %v1402_v1 }
  0x43   : > { %1242 = vmatpush3.bf16.msra.mxu0 %v1361_v29 }
  0x44   : > { %1247 = vmatprep.subr.bf16.mxu0 %v1402_v1 }
  0x46   : > { %1244 = vmatmul.mubr.msk.bf16.vlgmr.msra.gmra.mrb[4].mxu0 %vm1547_vm4, %v1060_v32 }
  0x47   : > { %1248 = vmatpush3.bf16.msra.mxu0 %v1362_v34  ;;  %1263 = vmatprep.mubr.msk.bf16.mxu0 %vm1403_vm0, %v1402_v1 }
  0x48   : > { %1249 = vmatprep.subr.bf16.mxu0 %v1402_v1 }
  0x4b   : > { %1250 = vmatpush3.bf16.msra.mxu0 %v1363_v35 }
  0x4c   : > { %1251 = vmatprep.subr.bf16.mxu0 %v1402_v1 }
  0x4f   : > { %1252 = vmatpush3.bf16.msra.mxu0 %v1364_v36  ;;  %v1379_v36 = vld [vmem:[%s1735_s2 + $0x8] sm:$0xff]  }
  0x50   : > { %1253 = vmatprep.subr.bf16.mxu0 %v1402_v1 }
  0x53   : > { %1254 = vmatpush3.bf16.msra.mxu0 %v1365_v37 }
  0x54   : > { %1255 = vmatprep.subr.bf16.mxu0 %v1402_v1 }
  0x57   : > { %1256 = vmatpush3.bf16.msra.mxu0 %v1366_v38 }
  0x58   : > { %1257 = vmatprep.subr.bf16.mxu0 %v1402_v1 }
  0x5b   : > { %1258 = vmatpush3.bf16.msra.mxu0 %v1367_v39  ;;  %v1380_v39 = vld [vmem:[%s1735_s2 + $0x10] sm:$0xff]  }
  0x5c   : > { %1259 = vmatprep.subr.bf16.mxu0 %v1402_v1 }
  0x5f   : > { %1260 = vmatpush3.bf16.msra.mxu0 %v1368_v43  ;;  %v1384_v43 = vld [vmem:[%s1735_s2 + $0x30] sm:$0xff]  }
  0x60   : > { %1261 = vmatprep.subr.bf16.mxu0 %v1402_v1 }
  0x63   : > { %1262 = vmatpush3.bf16.msra.mxu0 %v1369_v45  ;;  %v1386_v45 = vld [vmem:[%s1735_s2 + $0x80] sm:$0xff]  }
  0x66   : > { %1264 = vmatmul.mubr.msk.bf16.vlgmr.msra.gmra.mrb[8].mxu0 %vm1596_vm7, %v1087_v48  ;;  %v1390_v48 = vld [vmem:[%s1735_s2 + $0xa0] sm:$0xff]  }
  0xf9   : > { %v381_v58 = vpop.f32.mrb[0].mxu0 }
  0xfa   : > { %v1225_v59 = vpop.f32.mrb[1].mxu0 }
  0xfb   : > { %v384_v60 = vpop.f32.mrb[2].mxu0 }
  0xfc   : > { %v1226_v61 = vpop.f32.mrb[3].mxu0 }
 0x119   : > { %v470_v62 = vpop.f32.mrb[4].mxu0 }
 0x11a   : > { %v471_v63 = vadd.f32 %v470_v62, %v381_v58  ;;  %v1245_v0 = vpop.f32.mrb[5].mxu0  ;;  %v955_v62 = vrot.slane %v1480_v10, %v954_v57 }
 0x11b   : > { %v473_v2 = vpop.f32.mrb[6].mxu0 }
 0x11c   : > { %v474_v3 = vadd.f32 %v473_v2, %v384_v60  ;;  %v1246_v4 = vpop.f32.mrb[7].mxu0 }
 0x139   : > { %v577_v9 = vpop.f32.mrb[8].mxu0 }
 0x13a   : > { %v584_v11 = vadd.f32 %v577_v9, %v471_v63  ;;  %v1265_v15 = vpop.f32.mrb[9].mxu0 }
 0x13b   : > { %v580_v16 = vpop.f32.mrb[10].mxu0 }
 0x13c   : > { %v590_v17 = vadd.f32 %v589_v8, %v584_v11  ;;  %v585_v18 = vadd.f32 %v580_v16, %v474_v3  ;;  %v1266_v19 = vpop.f32.mrb[11].mxu0 }
 0x13e   : > { %vm592_vm8 = vcmp.ge.f32.partialorder %v590_v17, 0.0  ;;  %v598_v20 = vmul.f32 %v597_v13, %v590_v17  ;;  %v591_v21 = vadd.f32 %v589_v8, %v585_v18 }
 0x140   : > { %vm593_vm9 = vcmp.ge.f32.partialorder %v591_v21, 0.0  ;;  %v599_v22 = vmul.f32 %v597_v13, %v591_v21  ;;  %v600_v23 = vsel %vm592_vm8, %v590_v17, %v598_v20 }
 0x141   : > { %v602_v25 = vrot.slane %v600_v23, 7  ;;  %v608_v28 = vrot.slane %v600_v23, 1 }
 0x142   : > { %v601_v24 = vsel %vm593_vm9, %v591_v21, %v599_v22 }
 0x143   : > { %v603_v27 = vrot.slane %v601_v24, 7  ;;  %v609_v29 = vrot.slane %v601_v24, 1  ;;  %v631_v30 = vpack.c.bf16 %v601_v24, %v600_v23 }
 0x145   : > { %1284 = vmatmul.mubr.bf16.vlgmr.msra.gmra.mrb[0].mxu1 %v631_v30  ;;  %v604_v31 = vsel %vm244_vm1, %v602_v25, %v603_v27  ;;  %v605_v32 = vsel %vm244_vm1, %v603_v27, %v602_v25  ;;  %v610_v34 = vsel %vm255_vm5, %v608_v28, %v609_v29  ;;  %v611_v35 = vsel %vm255_vm5, %v609_v29, %v608_v28 }
 0x146   : > { %1288 = vmatpush3.bf16.msra.mxu1 %v1378_v26  ;;  %1303 = vmatprep.mubr.msk.bf16.mxu1 %vm1403_vm0, %v1402_v1  ;;  %v1122_v37 = vpack.c.bf16 %v604_v31, %v605_v32  ;;  %v1149_v38 = vpack.c.bf16 %v611_v35, %v610_v34 }
 0x147   : > { %1289 = vmatprep.subr.bf16.mxu1 %v1402_v1 }
 0x14a   : > { %1290 = vmatpush3.bf16.msra.mxu1 %v1379_v36 }
 0x14b   : > { %1291 = vmatprep.subr.bf16.mxu1 %v1402_v1 }
 0x14e   : > { %1292 = vmatpush3.bf16.msra.mxu1 %v1380_v39 }
 0x14f   : > { %1293 = vmatprep.subr.bf16.mxu1 %v1402_v1 }
 0x152   : > { %1294 = vmatpush3.bf16.msra.mxu1 %v1381_v40 }
 0x153   : > { %1295 = vmatprep.subr.bf16.mxu1 %v1402_v1 }
 0x156   : > { %1296 = vmatpush3.bf16.msra.mxu1 %v1382_v41 }
 0x157   : > { %1297 = vmatprep.subr.bf16.mxu1 %v1402_v1 }
 0x15a   : > { %1298 = vmatpush3.bf16.msra.mxu1 %v1383_v42 }
 0x15b   : > { %1299 = vmatprep.subr.bf16.mxu1 %v1402_v1 }
 0x15e   : > { %1300 = vmatpush3.bf16.msra.mxu1 %v1384_v43 }
 0x15f   : > { %1301 = vmatprep.subr.bf16.mxu1 %v1402_v1 }
 0x162   : > { %1302 = vmatpush3.bf16.msra.mxu1 %v1385_v44 }
 0x163   : > { %1307 = vmatprep.subr.bf16.mxu1 %v1402_v1 }
 0x165   : > { %1304 = vmatmul.mubr.msk.bf16.vlgmr.msra.gmra.mrb[0].mxu1 %vm1547_vm4, %v1122_v37 }
 0x166   : > { %1308 = vmatpush3.bf16.msra.mxu1 %v1386_v45  ;;  %1323 = vmatprep.mubr.msk.bf16.mxu1 %vm1403_vm0, %v1402_v1 }
 0x167   : > { %1309 = vmatprep.subr.bf16.mxu1 %v1402_v1 }
 0x16a   : > { %1310 = vmatpush3.bf16.msra.mxu1 %v1387_v46 }
 0x16b   : > { %1311 = vmatprep.subr.bf16.mxu1 %v1402_v1 }
 0x16e   : > { %1312 = vmatpush3.bf16.msra.mxu1 %v1388_v47 }
 0x16f   : > { %1313 = vmatprep.subr.bf16.mxu1 %v1402_v1 }
 0x172   : > { %1314 = vmatpush3.bf16.msra.mxu1 %v1389_v33 }
 0x173   : > { %1315 = vmatprep.subr.bf16.mxu1 %v1402_v1 }
 0x176   : > { %1316 = vmatpush3.bf16.msra.mxu1 %v1390_v48 }
 0x177   : > { %1317 = vmatprep.subr.bf16.mxu1 %v1402_v1 }
 0x17a   : > { %1318 = vmatpush3.bf16.msra.mxu1 %v1391_v50 }
 0x17b   : > { %1319 = vmatprep.subr.bf16.mxu1 %v1402_v1 }
 0x17e   : > { %1320 = vmatpush3.bf16.msra.mxu1 %v1392_v51 }
 0x17f   : > { %1321 = vmatprep.subr.bf16.mxu1 %v1402_v1 }
 0x182   : > { %1322 = vmatpush3.bf16.msra.mxu1 %v1393_v52 }
 0x185   : > { %1324 = vmatmul.mubr.msk.bf16.vlgmr.msra.gmra.mrb[0].mxu1 %vm1596_vm7, %v1149_v38 }
 0x258   : > { %v927_v58 = vpop.f32.mrb[0].mxu1 }
 0x259   : > { %v940_v59 = vmul.f32 %v939_v55, %v927_v58  ;;  %v1325_v60 = vpop.f32.mrb[1].mxu1 }
 0x25a   : > { %v930_v61 = vpop.f32.mrb[2].mxu1 }
 0x25b   : > { %v946_v1 = vadd.f32 %v945_v56, %v940_v59  ;;  %v941_v49 = vmul.f32 %v939_v55, %v930_v61  ;;  %v1326_v63 = vpop.f32.mrb[3].mxu1 }
 0x25d   : > { %v948_v0 = vadd.f32 %v946_v1, %v1486_v12  ;;  %v947_v2 = vadd.f32 %v945_v56, %v941_v49 }
 0x25f   : > { %vm950_vm10 = vcmp.ge.f32.partialorder %v948_v0, 0.0  ;;  %v956_v3 = vmul.f32 %v955_v62, %v948_v0  ;;  %v949_v6 = vadd.f32 %v947_v2, %v1489_v14 }
 0x261   : > { %v958_v4 = vsel %vm950_vm10, %v948_v0, %v956_v3  ;;  %vm951_vm11 = vcmp.ge.f32.partialorder %v949_v6, 0.0  ;;  %v957_v5 = vmul.f32 %v955_v62, %v949_v6 }
 0x262   : > { %960 = vst [vmem:[%s199_s30] sm:$0xff] %v958_v4 }
 0x263   : > { %v959_v7 = vsel %vm951_vm11, %v949_v6, %v957_v5 }
 0x264   : > { %961 = vst [vmem:[%s199_s30 + $0x8] sm:$0xff] %v959_v7 }
 0x265 PF: > { %s14_s15 = sadd.s32 1, %s1400_s15  }
 0x266   : > { %p11_p4 = scmp.ge.s32.totalorder %s14_s15, 4  }
 0x268   :  { %13 = sbr.rel (!%p11_p4) target bundleno = 1 (0x1), region = 70 }

</bundles_post_ra>
